<compile_context>
chip_gen: v7x
topology: tpu7x:2x2x1
jax: 0.10.0
libtpu: 0.0.40
codegen_flags: <defaults>
</compile_context>

<pallas_src>
import functools

import jax
import jax.numpy as jnp
from jax.experimental import pallas as pl
from jax.experimental.pallas import tpu as pltpu


def _f32(x):
    return x if x.dtype == jnp.float32 else x.astype(jnp.float32)


def _boxe_distance_norm(e, c, s):
    """Elementwise BoxE distance + row L2 norm (shared by all kernel paths).

    Uses u - l == |s| and (l <= e <= u) <=> (|e - c| <= 0.5*|s|), which is
    analytically identical to the reference formulation (branches agree at the
    box boundary) but avoids materializing l/u.
    """
    abs_s = jnp.abs(s)
    w = abs_s + 1.0                          # w >= 1 -> reciprocal is safe
    # Exact reciprocal keeps the 1e-5 tolerance; while the kernel is HBM-bound
    # the extra VALU refinement is hidden.
    # TODO(synk): switch to pl.reciprocal(approx=True) + one Newton step if the
    # bf16-input / v7x regime makes VALU the binding slot.
    inv_w = pl.reciprocal(w, approx=False)
    kappa = 0.5 * abs_s * (w - inv_w)
    abs_ec = jnp.abs(e - c)
    in_box = abs_ec <= 0.5 * abs_s
    dist = jnp.where(in_box, abs_ec * inv_w, abs_ec * w - kappa)
    # torch.norm(..., dim=1): L2 norm over the feature axis -> (tb, 1)
    return jnp.sqrt(jnp.sum(dist * dist, axis=1, keepdims=True))


def _boxe_kernel_sliced(h_ref, c_ref, s_ref, t_ref, out_ref):
    # BlockSpecs already delivered exactly the needed (tb, D) column blocks
    # (head half, rel centre, rel size, tail half) -> no in-kernel slicing.
    e = _f32(h_ref[...]) + _f32(t_ref[...])
    out_ref[...] = _boxe_distance_norm(e, _f32(c_ref[...]), _f32(s_ref[...]))


def _boxe_kernel_unsliced(h_ref, r_ref, t_ref, out_ref, *, dimension, eval_tail,
                          rel_full):
    """Fallback paths: head/tail full width; rel either half-sliced or full."""
    D = dimension
    if eval_tail:
        e = _f32(t_ref[:, 0:D]) + _f32(h_ref[:, D:2 * D])
    else:
        e = _f32(h_ref[:, 0:D]) + _f32(t_ref[:, D:2 * D])
    off = (2 * D if eval_tail else 0) if rel_full else 0
    c = _f32(r_ref[:, off:off + D])
    s = _f32(r_ref[:, off + D:off + 2 * D])
    out_ref[...] = _boxe_distance_norm(e, c, s)


def boxe_forward(head, rel, tail, dimension, eval_tail=True, block_rows=None,
                 buffer_count=None):
    """Pallas implementation of BoxE.forward."""
    B = head.shape[0]
    D = dimension
    assert head.shape == (B, 2 * D)
    assert rel.shape == (B, 4 * D)
    assert tail.shape == (B, 2 * D)

    itemsize = jnp.dtype(head.dtype).itemsize

    # --- Per-tensor column-slicing decision (lane alignment / (8,128) rule). ---
    full_slice = (D % 128 == 0)                       # head/tail/rel -> (tb, D)
    rel_half_slice = (not full_slice) and ((2 * D) % 128 == 0)
    if full_slice:
        cols_read = 4 * D
    elif rel_half_slice:
        cols_read = 6 * D
    else:
        cols_read = 8 * D
        # TODO(synk): pad D to a multiple of 128 upstream so the 2x-traffic,
        # lane-unaligned fallback path is never taken.

    # --- Chip-aware VMEM budget and batch tile size. ---
    try:
        vmem_cap = int(pltpu.get_tpu_info().vmem_capacity_bytes)
    except Exception:
        vmem_cap = 64 * 1024 * 1024        # conservative: v7x per-TC VMEM
    # Scoped-VMEM limit for this call: 16 MiB below physical, never above 96 MiB
    # (96 MiB on v5e/v6e's 128 MiB VMEM, 48 MiB on v7x's 64 MiB).
    vmem_limit = min(max(vmem_cap - 16 * 1024 * 1024, 32 * 1024 * 1024),
                     96 * 1024 * 1024)
    # Double-buffered *input* footprint budget; the rest of the limit is
    # headroom for compute temporaries and the (tb, 1) output.
    input_budget = min(vmem_limit // 2, 32 * 1024 * 1024)

    per_row_bytes = cols_read * itemsize   # bytes / row / single buffer set
    if block_rows is None:
        tb = (input_budget // (2 * per_row_bytes)) // 8 * 8
        tb = max(8, min(4096, tb))
    else:
        tb = block_rows
    # Keep >= 4 grid steps on large batches so both v7x TensorCores get >= 2
    # pipelinable steps each under the "parallel" axis.
    if B >= 4096:
        tb = min(tb, max(512, (B // 4) // 8 * 8))
    if tb >= B:
        tb = B                             # block == full dim is always legal
    else:
        tb = max(8, (tb // 8) * 8)         # partial tiles: sublane multiple of 8
    num_tiles = pl.cdiv(B, tb)

    pm = {} if buffer_count is None else {"pipeline_mode": pl.Buffered(buffer_count)}

    if full_slice:
        hcol = 1 if eval_tail else 0       # head[:, D:2D] vs head[:, 0:D]
        tcol = 0 if eval_tail else 1       # tail[:, 0:D]  vs tail[:, D:2D]
        ccol = 2 if eval_tail else 0       # rel[:, 2D:3D] vs rel[:, 0:D]
        scol = 3 if eval_tail else 1       # rel[:, 3D:4D] vs rel[:, D:2D]
        in_specs = [
            pl.BlockSpec((tb, D), lambda i, c=hcol: (i, c), **pm),
            pl.BlockSpec((tb, D), lambda i, c=ccol: (i, c), **pm),
            pl.BlockSpec((tb, D), lambda i, c=scol: (i, c), **pm),
            pl.BlockSpec((tb, D), lambda i, c=tcol: (i, c), **pm),
        ]
        kernel = _boxe_kernel_sliced
        operands = (head, rel, rel, tail)
    else:
        if rel_half_slice:
            rcol = 1 if eval_tail else 0   # rel[:, 2D:4D] vs rel[:, 0:2D]
            rel_spec = pl.BlockSpec((tb, 2 * D), lambda i, c=rcol: (i, c), **pm)
        else:
            rel_spec = pl.BlockSpec((tb, 4 * D), lambda i: (i, 0), **pm)
        in_specs = [
            pl.BlockSpec((tb, 2 * D), lambda i: (i, 0), **pm),
            rel_spec,
            pl.BlockSpec((tb, 2 * D), lambda i: (i, 0), **pm),
        ]
        kernel = functools.partial(
            _boxe_kernel_unsliced, dimension=D, eval_tail=eval_tail,
            rel_full=not rel_half_slice)
        operands = (head, rel, tail)

    out_specs = pl.BlockSpec((tb, 1), lambda i: (i, 0))

    cost = pl.CostEstimate(
        flops=20 * B * D,
        transcendentals=B,
        bytes_accessed=B * cols_read * itemsize + B * 4,
    )

    out = pl.pallas_call(
        kernel,
        out_shape=jax.ShapeDtypeStruct((B, 1), jnp.float32),
        grid_spec=pltpu.PrefetchScalarGridSpec(
            num_scalar_prefetch=0,
            grid=(num_tiles,),
            in_specs=in_specs,
            out_specs=out_specs,
        ),
        compiler_params=pltpu.CompilerParams(
            dimension_semantics=("parallel",),
            vmem_limit_bytes=int(vmem_limit),
        ),
        cost_estimate=cost,
    )(*operands)
    return out[:, 0]  # -> shape (B,), matching torch.norm(..., dim=1)


def boxe_reference(head, rel, tail, dimension, eval_tail=True):
    """Plain-JAX reference mirroring the PyTorch code (for sanity checking)."""
    D = dimension
    if eval_tail:
        e = tail[:, 0:D] + head[:, D:2 * D]
        c = rel[:, 2 * D:3 * D]
        s = rel[:, 3 * D:4 * D]
    else:
        e = head[:, 0:D] + tail[:, D:2 * D]
        c = rel[:, 0:D]
        s = rel[:, D:2 * D]
    l_ph = c - s / 2
    u_ph = c + s / 2
    l = jnp.minimum(l_ph, u_ph)
    u = jnp.maximum(l_ph, u_ph)
    w = u - l + 1
    kappa = 0.5 * (w - 1) * (w - 1 / w)
    in_box = jnp.logical_and(l <= e, e <= u)
    dist = jnp.where(in_box, jnp.abs(e - c) / w, jnp.abs(e - c) * w - kappa)
    return jnp.linalg.norm(dist, axis=1)


def _check(head, rel, tail, D, eval_tail, **kw):
    out = jax.block_until_ready(
        boxe_forward(head, rel, tail, D, eval_tail=eval_tail, **kw))
    ref = boxe_reference(head, rel, tail, D, eval_tail=eval_tail)
    assert out.shape == (head.shape[0],)
    assert jnp.allclose(out, ref, rtol=2e-5, atol=2e-5), (
        f"mismatch D={D} eval_tail={eval_tail}: "
        f"{float(jnp.max(jnp.abs(out - ref)))}")


if __name__ == "__main__":
    key = jax.random.PRNGKey(0)
    k_h, k_r, k_t = jax.random.split(key, 3)

    # Case 1: lane-aligned D -> fully column-sliced path (4x (tb, D) blocks),
    # multiple batch tiles so the DMA/compute pipeline is exercised.
    B1, D1 = 32, 128
    head1 = jax.random.normal(k_h, (B1, 2 * D1), dtype=jnp.float32)
    rel1 = jax.random.normal(k_r, (B1, 4 * D1), dtype=jnp.float32)
    tail1 = jax.random.normal(k_t, (B1, 2 * D1), dtype=jnp.float32)
    _check(head1, rel1, tail1, D1, eval_tail=True, block_rows=16)
    _check(head1, rel1, tail1, D1, eval_tail=False, block_rows=16)

    # Case 2: D % 128 != 0 but (2*D) % 128 == 0 -> rel-only column slicing.
    B2, D2 = 16, 64
    head2 = jax.random.normal(k_h, (B2, 2 * D2), dtype=jnp.float32)
    rel2 = jax.random.normal(k_r, (B2, 4 * D2), dtype=jnp.float32)
    tail2 = jax.random.normal(k_t, (B2, 2 * D2), dtype=jnp.float32)
    _check(head2, rel2, tail2, D2, eval_tail=True)
    _check(head2, rel2, tail2, D2, eval_tail=False)

    # Case 3: fully unaligned D -> full-width fallback path.
    B3, D3 = 8, 32
    head3 = jax.random.normal(k_h, (B3, 2 * D3), dtype=jnp.float32)
    rel3 = jax.random.normal(k_r, (B3, 4 * D3), dtype=jnp.float32)
    tail3 = jax.random.normal(k_t, (B3, 2 * D3), dtype=jnp.float32)
    _check(head3, rel3, tail3, D3, eval_tail=True)

    print("KERNEL_OK")
</pallas_src>

<mosaic_0001>
module attributes {stable_mosaic.version = 11 : i64} {
  func.func @_boxe_kernel_sliced(%arg0: i32, %arg1: memref<16x128xf32, #tpu.memory_space<vmem>>, %arg2: memref<16x128xf32, #tpu.memory_space<vmem>>, %arg3: memref<16x128xf32, #tpu.memory_space<vmem>>, %arg4: memref<16x128xf32, #tpu.memory_space<vmem>>, %arg5: memref<16x1xf32, #tpu.memory_space<vmem>>) attributes {dimension_semantics = [#tpu.dimension_semantics<parallel>], iteration_bounds = array<i64: 2>, scalar_prefetch = 0 : i64, scratch_operands = 0 : i64, tpu.core_type = #tpu.core_type<tc>, window_params = [{transform_indices = @transform_0, window_bounds = array<i64: 16, 128>}, {transform_indices = @transform_1, window_bounds = array<i64: 16, 128>}, {transform_indices = @transform_2, window_bounds = array<i64: 16, 128>}, {transform_indices = @transform_3, window_bounds = array<i64: 16, 128>}, {transform_indices = @transform_4, window_bounds = array<i64: 16, 1>}]} {
    %c0 = arith.constant 0 : index
    %c0_0 = arith.constant 0 : index
    %0 = vector.load %arg1[%c0, %c0_0] : memref<16x128xf32, #tpu.memory_space<vmem>>, vector<16x128xf32>
    %c0_1 = arith.constant 0 : index
    %c0_2 = arith.constant 0 : index
    %1 = vector.load %arg4[%c0_1, %c0_2] : memref<16x128xf32, #tpu.memory_space<vmem>>, vector<16x128xf32>
    %2 = arith.addf %0, %1 : vector<16x128xf32>
    %c0_3 = arith.constant 0 : index
    %c0_4 = arith.constant 0 : index
    %3 = vector.load %arg2[%c0_3, %c0_4] : memref<16x128xf32, #tpu.memory_space<vmem>>, vector<16x128xf32>
    %c0_5 = arith.constant 0 : index
    %c0_6 = arith.constant 0 : index
    %4 = vector.load %arg3[%c0_5, %c0_6] : memref<16x128xf32, #tpu.memory_space<vmem>>, vector<16x128xf32>
    %5 = math.absf %4 : vector<16x128xf32>
    %cst = arith.constant 1.000000e+00 : f32
    %6 = vector.broadcast %cst : f32 to vector<16x128xf32>
    %7 = arith.addf %5, %6 : vector<16x128xf32>
    %8 = tpu.reciprocal %7 : vector<16x128xf32> -> vector<16x128xf32>
    %cst_7 = arith.constant 5.000000e-01 : f32
    %9 = vector.broadcast %cst_7 : f32 to vector<16x128xf32>
    %10 = arith.mulf %9, %5 : vector<16x128xf32>
    %11 = arith.subf %7, %8 : vector<16x128xf32>
    %12 = arith.mulf %10, %11 : vector<16x128xf32>
    %13 = arith.subf %2, %3 : vector<16x128xf32>
    %14 = math.absf %13 : vector<16x128xf32>
    %cst_8 = arith.constant 5.000000e-01 : f32
    %15 = vector.broadcast %cst_8 : f32 to vector<16x128xf32>
    %16 = arith.mulf %15, %5 : vector<16x128xf32>
    %17 = arith.cmpf ole, %14, %16 : vector<16x128xf32>
    %18 = arith.mulf %14, %8 : vector<16x128xf32>
    %19 = arith.mulf %14, %7 : vector<16x128xf32>
    %20 = arith.subf %19, %12 : vector<16x128xf32>
    %21 = arith.select %17, %18, %20 : vector<16x128xi1>, vector<16x128xf32>
    %22 = arith.mulf %21, %21 : vector<16x128xf32>
    %cst_9 = arith.constant dense<0.000000e+00> : vector<16xf32>
    %23 = vector.multi_reduction <add>, %22, %cst_9 [1] : vector<16x128xf32> to vector<16xf32>
    %24 = vector.shape_cast %23 : vector<16xf32> to vector<16x1xf32>
    %25 = math.sqrt %24 : vector<16x1xf32>
    %c0_10 = arith.constant 0 : index
    %c0_11 = arith.constant 0 : index
    %26 = vector.load %arg5[%c0_10, %c0_11] : memref<16x1xf32, #tpu.memory_space<vmem>>, vector<16x1xf32>
    tpu.vector_store %arg5[%c0_10, %c0_11], %25 {strides = array<i32>} : memref<16x1xf32, #tpu.memory_space<vmem>>, vector<16x1xf32>,
    return
  }
  func.func @transform_0(%arg0: i32) -> (i32, i32) {
    %c1_i32 = arith.constant 1 : i32
    %c0_i32 = arith.constant 0 : i32
    return %arg0, %c1_i32 : i32, i32
  }
  func.func @transform_1(%arg0: i32) -> (i32, i32) {
    %c2_i32 = arith.constant 2 : i32
    %c0_i32 = arith.constant 0 : i32
    return %arg0, %c2_i32 : i32, i32
  }
  func.func @transform_2(%arg0: i32) -> (i32, i32) {
    %c3_i32 = arith.constant 3 : i32
    %c0_i32 = arith.constant 0 : i32
    return %arg0, %c3_i32 : i32, i32
  }
  func.func @transform_3(%arg0: i32) -> (i32, i32) {
    %c0_i32 = arith.constant 0 : i32
    %c0_i32_0 = arith.constant 0 : i32
    return %arg0, %c0_i32 : i32, i32
  }
  func.func @transform_4(%arg0: i32) -> (i32, i32) {
    %c0_i32 = arith.constant 0 : i32
    %c0_i32_0 = arith.constant 0 : i32
    return %arg0, %c0_i32 : i32, i32
  }
}

</mosaic_0001>

<bundles_post_ra>
// kernel: tpu_custom_call.1
= control target key start
LH: loop header
LB: loop body
LE: loop exit
PB: predicated region body
PF: predicated region fallthrough
CT: control target
= control target key end

     0   :  { %s1093_s0 = inlined_call_operand.hbm [shape: f32[32,256], index: 0, kind: input, shape index: {}]   ;;  %s1094_s1 = inlined_call_operand.hbm [shape: f32[32,512], index: 1, kind: input, shape index: {}]   ;;  %s1095_s2 = inlined_call_operand.hbm [shape: f32[32,512], index: 2, kind: input, shape index: {}]   ;;  %s1096_s3 = inlined_call_operand.hbm [shape: f32[32,256], index: 3, kind: input, shape index: {}]   ;;  %s1097_s4 = inlined_call_operand.vmem [shape: f32[32,1], index: 4, kind: output, shape index: {}]  }
   0x1   :  { %1105 = sst [smem:[#allocation13_spill]] %s1093_s0 }
   0x2   :  { %1106 = sst [smem:[#allocation14_spill]] %s1094_s1 }
   0x3   :  { %9 = vsyncpa [#allocation3], 0 }
   0x4   :  { %11 = vsyncpa [#allocation3 + $0x1], 0 }
   0x5   :  { %12 = vsyncpa [#allocation5], 0 }
   0x6   :  { %14 = vsyncpa [#allocation5 + $0x1], 0 }
   0x7   :  { %15 = vsyncpa [#allocation8], 0 }
   0x8   :  { %17 = vsyncpa [#allocation8 + $0x1], 0  ;;  %s842_s15 = smov 0   ;;  %s844_s16 = smov 0  }
   0x9   :  { %s846_s17 = smov 0   ;;  %s848_s18 = smov 0  }
   0xa LB: > { %s861_s19 = sadd.s32 4294967295, %s807_s18   ;;  %s864_s20 = sadd.s32 1, %s807_s18   ;;  %s807_s18 = sphi %s848_s18, %s1124_s18   ;;  %s803_s17 = sphi %s846_s17, %s1123_s17   ;;  %s799_s16 = sphi %s844_s16, %s1122_s16   ;;  %s795_s15 = sphi %s842_s15, %s1121_s15  }
   0xb   : > { %s27_s21 = ssub.s32 %s807_s18, %s864_s20  ;;  %s30_s22 = sadd.s32 1, %s803_s17 }
   0xc   : > { %p28_p0 = scmp.eq.s32.totalorder %s27_s21, 0  ;;  %p37_p1 = scmp.ne.s32.totalorder %s803_s17, %s799_s16 }
   0xd   : > { %p38_p2 = scmp.eq.s32.totalorder %s807_s18, 0  ;;  %p43_p3 = scmp.ne.s32.totalorder %s799_s16, %s795_s15 }
   0xe   : > { %s874_s23 = scalar_select %p28_p0, %s803_s17, %s30_s22  }
   0xf   : > { %p39_p4 = por %p38_p2, %p37_p1  ;;  %p44_p5 = scmp.eq.s32.totalorder %s861_s19, 0 }
  0x10   : > { %1107 = sst [smem:[#allocation12_spill]] %s874_s23  ;;  %p597_p6 = scmp.lt.s32.totalorder %s807_s18, 2 }
  0x11   : > { %p878_p7 = por %p44_p5, %p43_p3  ;;  %s883_s25 = sand.u32 1, %s803_s17  }
  0x12   : > { %s886_s26 = sshll.u32 %s883_s25, 4  ;;  %p888_p8 = pnand %p597_p6, %p39_p4 }
  0x13   : > { %s1108_s24 = scalar_select %p878_p7, 1, 0 }
  0x14   : > { %s194_s28 = sand.u32 1, %s807_s18   ;;  %s572_s29 = sshll.u32 %s807_s18, 10 }
  0x15   : > { %s198_s30 = scalar_lea.vmem [#allocation4], %s886_s26  ;;  %s1110_s1 = sld [smem:[#allocation14_spill]] }
  0x16   : > { %s207_s5 = sshll.u32 %s198_s30, 4  ;;  %s904_s10 = scalar_lea.sflag [#allocation5], %s194_s28  ;;  %s900_s5 = int_to_ptr.vmem [resolvable:$true] %s207_s5 }
  0x17   : > { %p909_p10 = pneg %p888_p8 }
  0x1b   : > { %s449_s8 = scalar_lea.hbm %s1110_s1, %s572_s29  ;;  %s647_s15 = scalar_lea.hbm %s1110_s1, 2048 }
  0x1c   : > { %s902_s9 = scalar_lea.hbm %s449_s8, 256  ;;  %s672_s11 = scalar_lea.hbm %s449_s8, 512 }
  0x1d   : > { %p643_p9 = scmp.ne.s32.totalorder %s902_s9, %s672_s11  ;;  %p648_p13 = scmp.lt.u32.totalorder %s902_s9, %s1110_s1 }
  0x1e   : > { %p649_p0 = scmp.lt.u32.totalorder %s647_s15, %s672_s11  ;;  %p651_p2 = scmp.lt.u32.totalorder %s672_s11, %s902_s9 }
  0x1f   : > { %p645_p11 = pnand %p909_p10, %p643_p9 }
  0x20   : > { %p650_p1 = por %p649_p0, %p648_p13 }
  0x21   : > { %p646_p12 = pneg %p645_p11 }
  0x22   : > { %p652_p3 = por %p651_p2, %p650_p1 }
  0x24   : > { %p653_p4 = pnand %p652_p3, %p646_p12 }
  0x26   : > { %656 = shalt.err (!%p653_p4)
}
  0x27   : > { %s657_s28 = scalar_lea.vmem %s900_s5, 256  ;;  %s809_s30 = smov [#allocation4]  }
  0x28   : > { %p658_p5 = scmp.ne.s32.totalorder %s900_s5, %s657_s28  ;;  %s662_s6 = sshll.u32 %s809_s30, 4  ;;  %s663_s6 = int_to_ptr.vmem [resolvable:$false] %s662_s6 }
  0x29   : > { %s664_s7 = scalar_lea.vmem %s663_s6, 512  ;;  %p665_p11 = scmp.lt.s32.totalorder %s900_s5, %s663_s6 }
  0x2a   : > { %p660_p6 = pnand %p658_p5, %p909_p10  ;;  %p666_p7 = scmp.lt.s32.totalorder %s664_s7, %s657_s28 }
  0x2c   : > { %p661_p9 = pneg %p660_p6  ;;  %p667_p13 = por %p666_p7, %p665_p11 }
  0x2e   : > { %p668_p0 = pnand %p667_p13, %p661_p9 }
  0x30   : > { %671 = shalt.err (!%p668_p0)
}
  0x31   : > { %s1099_s8 = smov 512   ;;  %s1100_s11 = smov 128  }
  0x32   : > { %s1102_s13 = smov 8   ;;  %s941_s21 = scalar_lea.hbm %s1095_s2, %s572_s29 }
  0x33   : > { %590 = dma.hbm_to_vmem [thread:$0]  (!%p888_p8), %s902_s9, 256, %s900_s5, %s904_s10, %s1099_s8, %s1100_s11, %s1102_s13  }
  0x34   : > { %p562_p7 = scmp.ge.s32.totalorder %s807_s18, 1  ;;  %s945_s22 = scalar_lea.hbm %s941_s21, 384 }
  0x35   : > { %p260_p12 = scmp.lt.s32.totalorder %s807_s18, 3  ;;  %s1104_s30 = sshll.u32 %s807_s18, 9 }
  0x36   : > { %s1113_s0 = sld [smem:[#allocation13_spill]]  ;;  %s175_s9 = scalar_lea.vmem [#allocation2], %s886_s26 }
  0x37   : > { %p948_p1 = pnand %p562_p7, %p260_p12  ;;  %s184_s8 = sshll.u32 %s175_s9, 4  ;;  %s961_s8 = int_to_ptr.vmem [resolvable:$true] %s184_s8 }
  0x38   : > { %s172_s29 = scalar_lea.sflag [#allocation3], %s883_s25 }
  0x39   : > { %s1112_s28 = scalar_select %p948_p1, 1, 0 }
  0x3c   : > { %s442_s5 = scalar_lea.hbm %s1113_s0, %s1104_s30  ;;  %s678_s6 = scalar_lea.hbm %s1113_s0, 1024 }
  0x3d   : > { %s959_s14 = scalar_lea.hbm %s442_s5, 128  ;;  %s703_s15 = scalar_lea.hbm %s442_s5, 384 }
  0x3e   : > { %p674_p2 = scmp.ne.s32.totalorder %s959_s14, %s703_s15  ;;  %p679_p5 = scmp.lt.u32.totalorder %s959_s14, %s1113_s0 }
  0x3f   : > { %p680_p6 = scmp.lt.u32.totalorder %s678_s6, %s703_s15  ;;  %p682_p11 = scmp.lt.u32.totalorder %s703_s15, %s959_s14 }
  0x40   : > { %p676_p3 = pnand %p674_p2, %p909_p10 }
  0x41   : > { %p681_p9 = por %p680_p6, %p679_p5 }
  0x42   : > { %p677_p4 = pneg %p676_p3 }
  0x43   : > { %p683_p13 = por %p682_p11, %p681_p9 }
  0x45   : > { %p684_p0 = pnand %p683_p13, %p677_p4 }
  0x47   : > { %687 = shalt.err (!%p684_p0)
}
  0x48   : > { %s688_s5 = scalar_lea.vmem %s961_s8, 256  ;;  %s813_s11 = smov [#allocation2]  }
  0x49   : > { %p689_p7 = scmp.ne.s32.totalorder %s961_s8, %s688_s5  ;;  %s693_s13 = sshll.u32 %s813_s11, 4  ;;  %s694_s13 = int_to_ptr.vmem [resolvable:$false] %s693_s13 }
  0x4a   : > { %s695_s30 = scalar_lea.vmem %s694_s13, 512  ;;  %p696_p3 = scmp.lt.s32.totalorder %s961_s8, %s694_s13 }
  0x4b   : > { %p691_p12 = pnand %p689_p7, %p909_p10  ;;  %p697_p1 = scmp.lt.s32.totalorder %s695_s30, %s688_s5 }
  0x4d   : > { %p692_p2 = pneg %p691_p12  ;;  %p698_p5 = por %p697_p1, %p696_p3 }
  0x4f   : > { %p699_p6 = pnand %p698_p5, %p692_p2 }
  0x51   : > { %702 = shalt.err (!%p699_p6)
}
  0x52   : > { %s814_s9 = smov 256   ;;  %s1114_s15 = smov 8  }
  0x53   : > { %s1115_s6 = smov 128   ;;  %s221_s7 = scalar_lea.vmem [#allocation6], %s886_s26 }
  0x54   : > { %587 = dma.hbm_to_vmem [thread:$0]  (!%p888_p8), %s959_s14, 256, %s961_s8, %s172_s29, %s814_s9, %s1115_s6, %s1114_s15  }
  0x55   : > { %s230_s5 = sshll.u32 %s221_s7, 4  ;;  %s734_s11 = scalar_lea.hbm %s941_s21, 640  ;;  %s990_s5 = int_to_ptr.vmem [resolvable:$true] %s230_s5 }
  0x56   : > { %p705_p1 = scmp.ne.s32.totalorder %s945_s22, %s734_s11  ;;  %s709_s0 = scalar_lea.hbm %s1095_s2, 2048 }
  0x57   : > { %p710_p11 = scmp.lt.u32.totalorder %s945_s22, %s1095_s2  ;;  %p711_p13 = scmp.lt.u32.totalorder %s709_s0, %s734_s11 }
  0x58   : > { %p707_p4 = pnand %p705_p1, %p909_p10  ;;  %p713_p7 = scmp.lt.u32.totalorder %s734_s11, %s945_s22 }
  0x59   : > { %p712_p0 = por %p711_p13, %p710_p11 }
  0x5a   : > { %p708_p9 = pneg %p707_p4 }
  0x5b   : > { %p714_p12 = por %p713_p7, %p712_p0 }
  0x5d   : > { %p715_p2 = pnand %p714_p12, %p708_p9 }
  0x5f   : > { %718 = shalt.err (!%p715_p2)
}
  0x60   : > { %s719_s8 = scalar_lea.vmem %s990_s5, 256  ;;  %s815_s21 = smov [#allocation6]  }
  0x61   : > { %p720_p3 = scmp.ne.s32.totalorder %s990_s5, %s719_s8  ;;  %s724_s14 = sshll.u32 %s815_s21, 4  ;;  %s725_s14 = int_to_ptr.vmem [resolvable:$false] %s724_s14 }
  0x62   : > { %s726_s1 = scalar_lea.vmem %s725_s14, 512  ;;  %p727_p1 = scmp.lt.s32.totalorder %s990_s5, %s725_s14 }
  0x63   : > { %p722_p5 = pnand %p720_p3, %p909_p10  ;;  %p728_p4 = scmp.lt.s32.totalorder %s726_s1, %s719_s8 }
  0x65   : > { %p723_p6 = pneg %p722_p5  ;;  %p729_p11 = por %p728_p4, %p727_p1 }
  0x67   : > { %p730_p13 = pnand %p729_p11, %p723_p6 }
  0x69   : > { %733 = shalt.err (!%p730_p13)
}
  0x6a   : > { %s1116_s0 = smov 512   ;;  %s1117_s23 = sshll.u32 %s807_s18, 9 }
  0x6b   : > { %593 = dma.hbm_to_vmem [thread:$0]  (!%p888_p8), %s945_s22, 256, %s990_s5, %s904_s10, %s1116_s0, %s1115_s6, %s1114_s15  }
  0x6c   : > { %s1022_s11 = scalar_lea.hbm %s1096_s3, %s1117_s23  ;;  %s244_s13 = scalar_lea.vmem [#allocation7], %s886_s26 }
  0x6d   : > { %s252_s30 = sshll.u32 %s244_s13, 4  ;;  %s241_s8 = scalar_lea.sflag [#allocation8], %s883_s25  ;;  %s1025_s30 = int_to_ptr.vmem [resolvable:$true] %s252_s30 }
  0x6e   : > { %s735_s21 = scalar_lea.hbm %s1022_s11, 256  ;;  %s740_s22 = scalar_lea.hbm %s1096_s3, 1024 }
  0x6f   : > { %p736_p9 = scmp.ne.s32.totalorder %s1022_s11, %s735_s21  ;;  %p741_p12 = scmp.lt.u32.totalorder %s1022_s11, %s1096_s3 }
  0x70   : > { %p742_p2 = scmp.lt.u32.totalorder %s740_s22, %s735_s21  ;;  %p744_p5 = scmp.lt.u32.totalorder %s735_s21, %s1022_s11 }
  0x71   : > { %p738_p0 = pnand %p736_p9, %p909_p10 }
  0x72   : > { %p743_p3 = por %p742_p2, %p741_p12 }
  0x73   : > { %p739_p7 = pneg %p738_p0 }
  0x74   : > { %p745_p6 = por %p744_p5, %p743_p3 }
  0x76   : > { %p746_p1 = pnand %p745_p6, %p739_p7 }
  0x78   : > { %749 = shalt.err (!%p746_p1)
}
  0x79   : > { %s750_s26 = scalar_lea.vmem %s1025_s30, 256  ;;  %s816_s1 = smov [#allocation7]  }
  0x7a   : > { %p751_p4 = scmp.ne.s32.totalorder %s1025_s30, %s750_s26  ;;  %s755_s0 = sshll.u32 %s816_s1, 4  ;;  %s756_s0 = int_to_ptr.vmem [resolvable:$false] %s755_s0 }
  0x7b   : > { %s757_s23 = scalar_lea.vmem %s756_s0, 512  ;;  %p758_p9 = scmp.lt.s32.totalorder %s1025_s30, %s756_s0 }
  0x7c   : > { %p753_p11 = pnand %p751_p4, %p909_p10  ;;  %p759_p0 = scmp.lt.s32.totalorder %s757_s23, %s750_s26 }
  0x7e   : > { %p754_p13 = pneg %p753_p11  ;;  %p760_p12 = por %p759_p0, %p758_p9 }
  0x80   : > { %p761_p2 = pnand %p760_p12, %p754_p13 }
  0x82   : > { %764 = shalt.err (!%p761_p2)
}
  0x83   : > { %596 = dma.hbm_to_vmem [thread:$0]  (!%p888_p8), %s1022_s11, 256, %s1025_s30, %s241_s8, %s814_s9, %s1115_s6, %s1114_s15  }
  0x84   : > { %p1118_p10 = scmp.ne.s32.totalorder %s1112_s28, 0 }
  0x85   : > { %s266_s12 = sand.u32 (!%p1118_p10), 1, %s799_s16   ;;  %p1119_p7 = scmp.ne.s32.totalorder (!%p1118_p10), %s1108_s24, 0 }
  0x86   : > { %264 = sbr.rel (%p1118_p10) target bundleno = 335 (0x14f), region = 36  ;;  %s1057_s29 = sshll.u32 (!%p1118_p10), %s266_s12, 4 }
  0x87   : > { %s267_s7 = scalar_lea.sflag (!%p1118_p10), [#allocation3], %s266_s12  ;;  %s270_s13 = scalar_lea.vmem (!%p1118_p10), [#allocation2], %s1057_s29 }
  0x8d   : > { %782 = dma.done.wait (%p1119_p7), %s267_s7, 256  }
  0x8e   : > { %784 = vsyncadd (%p1119_p7), %s267_s7, 4294967040  ;;  %s275_s25 = sand.u32 1, %s861_s19   ;;  %s279_s28 = scalar_lea.vmem [#allocation4], %s1057_s29 }
  0x8f   : > { %s276_s27 = scalar_lea.sflag [#allocation5], %s275_s25 }
  0x90   : > { %786 = dma.done.wait (%p1119_p7), %s276_s27, 512  }
  0x91   : > { %788 = vsyncadd (%p1119_p7), %s276_s27, 4294966784  ;;  %s288_s9 = scalar_lea.vmem [#allocation6], %s1057_s29  ;;  %s294_s15 = scalar_lea.sflag [#allocation8], %s266_s12 }
  0x92   : > { %s297_s6 = scalar_lea.vmem [#allocation7], %s1057_s29 }
  0x93   : > { %790 = dma.done.wait (%p1119_p7), %s294_s15, 256  }
  0x94   : > { %792 = vsyncadd (%p1119_p7), %s294_s15, 4294967040  ;;  %v355_v0 = vld [vmem:[%s288_s9] sm:$0xff]  ;;  %v356_v4 = vld [vmem:[%s288_s9 + $0x8] sm:$0xff]  ;;  %s567_s24 = sshll.u32 %s861_s19, 1  ;;  %vm403_vm2 = vcmask 7168  }
  0x95   : > { %v347_v1 = vld [vmem:[%s270_s13] sm:$0xff]  ;;  %v357_v3 = vand.u32 2147483647, %v355_v0  ;;  %v348_v5 = vld [vmem:[%s270_s13 + $0x8] sm:$0xff]  ;;  %v358_v7 = vand.u32 2147483647, %v356_v4 }
  0x96   : > { %v349_v2 = vld [vmem:[%s297_s6] sm:$0xff]  ;;  %v350_v6 = vld [vmem:[%s297_s6 + $0x8] sm:$0xff]  ;;  %p342_p8 = scmp.lt.s32.totalorder %s567_s24, 3 }
  0x97   : > { %v359_v8 = vadd.f32 1.0, %v357_v3  ;;  %v351_v9 = vadd.f32 %v349_v2, %v347_v1  ;;  %v360_v10 = vadd.f32 1.0, %v358_v7  ;;  %v353_v11 = vld [vmem:[%s279_s28] sm:$0xff]  ;;  %v352_v12 = vadd.f32 %v350_v6, %v348_v5  ;;  %v354_v13 = vld [vmem:[%s279_s28 + $0x8] sm:$0xff] }
  0x98   : > { %v363_v18 = vmul.f32 0.5, %v357_v3  ;;  %v364_v20 = vmul.f32 0.5, %v358_v7  ;;  %s1126_s24 = smov (!%p342_p8, %s567_s24), 3 }
  0x99   : > { %634 = vrcp.f32 %v359_v8  ;;  %v369_v14 = vsub.f32 %v351_v9, %v353_v11  ;;  %v370_v15 = vsub.f32 %v352_v12, %v354_v13  ;;  %s568_s11 = sshll.u32 %s1126_s24, 3 }
  0x9a   : > { %636 = vrcp.f32 %v360_v10  ;;  %s345_s21 = scalar_lea.vmem %s1097_s4, %s568_s11 }
  0x9b   : > { %v371_v16 = vand.u32 2147483647, %v369_v14  ;;  %v372_v17 = vand.u32 2147483647, %v370_v15 }
  0x9d   : > { %v377_v23 = vmul.f32 %v371_v16, %v359_v8  ;;  %v378_v25 = vmul.f32 %v372_v17, %v360_v10  ;;  %vm373_vm0 = vcmp.le.f32.partialorder %v371_v16, %v363_v18  ;;  %vm374_vm1 = vcmp.le.f32.partialorder %v372_v17, %v364_v20 }
  0xa3   : > { %v635_v19 = vpop.eup %634 }
  0xa4   : > { %v637_v21 = vpop.eup %636  ;;  %v365_v22 = vsub.f32 %v359_v8, %v635_v19  ;;  %v375_v27 = vmul.f32 %v635_v19, %v371_v16 }
  0xa5   : > { %v366_v24 = vsub.f32 %v360_v10, %v637_v21  ;;  %v376_v29 = vmul.f32 %v637_v21, %v372_v17 }
  0xa6   : > { %v367_v26 = vmul.f32 %v365_v22, %v363_v18 }
  0xa7   : > { %v368_v28 = vmul.f32 %v366_v24, %v364_v20 }
  0xa8   : > { %v379_v30 = vsub.f32 %v377_v23, %v367_v26 }
  0xa9   : > { %v380_v31 = vsub.f32 %v378_v25, %v368_v28 }
  0xaa   : > { %v381_v32 = vsel %vm373_vm0, %v375_v27, %v379_v30 }
  0xab   : > { %v383_v33 = vmul.f32 %v381_v32, %v381_v32  ;;  %v382_v34 = vsel %vm374_vm1, %v376_v29, %v380_v31 }
  0xac   : > { %v384_v35 = vmul.f32 %v382_v34, %v382_v34 }
  0xad   : > { %385 = vadd.xlane.f32.xlu0 %v383_v33 }
  0xb1   : > { %387 = vadd.xlane.f32.xlu0 %v384_v35 }
 0x13a   : > { %v386_v36 = vpop.xlane.xlu0 %385 }
 0x13b   : > { %638 = vrsqrt.f32 %v386_v36  ;;  %vm391_vm3 = vcmp.eq.f32.partialorder %v386_v36, inf  ;;  %v394_v40 = vand.u32 2147483648, %v386_v36  ;;  %vm393_vm4 = vcmp.eq.f32.partialorder %v386_v36, 0.0 }
 0x13e   : > { %v388_v37 = vpop.xlane.xlu0 %387 }
 0x13f   : > { %640 = vrsqrt.f32 %v388_v37  ;;  %vm398_vm5 = vcmp.eq.f32.partialorder %v388_v37, inf  ;;  %v401_v45 = vand.u32 2147483648, %v388_v37  ;;  %vm400_vm6 = vcmp.eq.f32.partialorder %v388_v37, 0.0 }
 0x145   : > { %v639_v38 = vpop.eup %638 }
 0x146   : > { %v390_v39 = vmul.f32 %v639_v38, %v386_v36 }
 0x148   : > { %v392_v41 = vsel %vm391_vm3, %v386_v36, %v390_v39 }
 0x149   : > { %v641_v42 = vpop.eup %640  ;;  %v395_v43 = vsel %vm393_vm4, %v394_v40, %v392_v41 }
 0x14a   : > { %404 = vst.msk [vmem:[%s345_s21] sm:$0xff] %vm403_vm2, %v395_v43  ;;  %v397_v44 = vmul.f32 %v641_v42, %v388_v37 }
 0x14c   : > { %v399_v46 = vsel %vm398_vm5, %v388_v37, %v397_v44 }
 0x14d   : > { %v402_v47 = vsel %vm400_vm6, %v401_v45, %v399_v46 }
 0x14e   : > { %405 = vst.msk [vmem:[%s345_s21 + $0x8] sm:$0xff] %vm403_vm2, %v402_v47 }
 0x14f PF: > { %s1120_s19 = sld [smem:[#allocation12_spill]]  ;;  %p20_p3 = scmp.ge.s32.totalorder %s864_s20, 4  }
 0x150   : > { %s1121_s15 = smov %s799_s16  ;;  %s1122_s16 = smov %s803_s17 }
 0x151   : > { %s1124_s18 = smov %s864_s20  ;;  %22 = sbr.rel (!%p20_p3) target bundleno = 10 (0xa), region = 113 }
 0x155   : > { %s1123_s17 = smov %s1120_s19 }
 0x158   :  { %428 = vsyncpa [#allocation3], 1 }
 0x159   :  { %430 = vsyncpa [#allocation3 + $0x1], 1 }
 0x15a   :  { %431 = vsyncpa [#allocation5], 1 }
 0x15b   :  { %433 = vsyncpa [#allocation5 + $0x1], 1 }
 0x15c   :  { %434 = vsyncpa [#allocation8], 1 }
 0x15d   :  { %436 = vsyncpa [#allocation8 + $0x1], 1 }

</bundles_post_ra>
